<compile_context>
chip_gen: v5e
topology: v5e:2x2
jax: 0.10.0
libtpu: 0.0.40
codegen_flags: <defaults>
</compile_context>

<pallas_src>
import numpy as np
from concurrent.futures import ThreadPoolExecutor

import jax
import jax.numpy as jnp
from jax import lax
from jax.experimental import pallas as pl
from jax.experimental.pallas import tpu as pltpu

try:  # C implementation if available; falls back to pure python below.
    from scipy.optimize import linear_sum_assignment as _scipy_lsa
except Exception:  # pragma: no cover
    _scipy_lsa = None


# ----------------------------------------------------------------------------
# VMEM sizing helpers (layout-aware: lanes pad to 128, sublanes to 8*(4/itemsize))
# ----------------------------------------------------------------------------
def _ceil_to(x, m):
    return ((x + m - 1) // m) * m


def _vmem_capacity_bytes():
    try:
        info = pltpu.get_tpu_info()
        for attr in ("vmem_capacity_bytes", "vmem_size_bytes"):
            v = getattr(info, attr, None)
            if v:
                return int(v)
    except Exception:
        pass
    return 64 << 20  # conservative fallback: v7x per-TensorCore VMEM


def _vmem_limit_bytes():
    # ~96 MiB on 128 MiB parts (v5e/v6e), ~48 MiB on v7x's 64 MiB.
    return (3 * _vmem_capacity_bytes()) // 4


def _padded_block_bytes(shape, dtype):
    it = np.dtype(dtype).itemsize
    s = list(shape)
    s[-1] = _ceil_to(s[-1], 128)                        # lane dim
    if len(s) >= 2:
        s[-2] = _ceil_to(s[-2], 8 * max(1, 4 // it))    # sublane dim (packed dtypes)
    n = 1
    for d in s:
        n *= d
    return n * it


def _cost_tile_bytes(bt, A, P):
    bf, f32, i32 = jnp.bfloat16, jnp.float32, jnp.int32
    io = (2 * _padded_block_bytes((bt, A, P), bf)       # logits + label_para
          + _padded_block_bytes((bt, A, 2), f32)        # classification
          + _padded_block_bytes((bt, 2, A), f32)        # label_classi (channel-major)
          + _padded_block_bytes((bt, 1, 1), i32)        # para_num
          + _padded_block_bytes((bt, A, A), f32))       # cost output
    live = (3 * _padded_block_bytes((bt, A, P), f32)    # prob, prob_m, lp_m
            + 3 * _padded_block_bytes((bt, A, A), f32)  # cross, para_cost, class_cost
            + _padded_block_bytes((bt, 1, P), f32))     # column mask
    return 2 * io + live                                # I/O blocks double-buffered


def _loss_tile_bytes(bt, A, P):
    bf, f32, i32 = jnp.bfloat16, jnp.float32, jnp.int32
    io = (2 * _padded_block_bytes((bt, A, P), bf)       # logits + label_para
          + 2 * _padded_block_bytes((bt, 2, A), f32)    # classification / permuted label
          + _padded_block_bytes((bt, 1, A), f32)        # class mask (permuted)
          + _padded_block_bytes((bt, A, 1), i32)        # Hungarian column indices
          + _padded_block_bytes((bt, 1, 1), i32))       # para_num
    live = (3 * _padded_block_bytes((bt, A, P), f32)    # prob, lp_perm, masked |diff|
            + _padded_block_bytes((bt, A, A), bf)       # permutation one-hot
            + _padded_block_bytes((bt, 1, P), f32))
    return 2 * io + live


def _pick_batch_tile(b_s, tile_bytes_fn):
    """Largest divisor of b_s whose estimated VMEM footprint fits the budget."""
    budget = int(_vmem_limit_bytes() * 0.75)
    bt = 1
    for cand in range(1, b_s + 1):
        if b_s % cand == 0 and tile_bytes_fn(cand) <= budget:
            bt = cand
    return bt


# ----------------------------------------------------------------------------
# In-kernel helpers
# ----------------------------------------------------------------------------
def _softmax_articles(logits_f32, approx_recip=False):
    """softmax over the article axis (torch .softmax(dim=1)); input (Bt, A, P) f32."""
    m = jnp.max(logits_f32, axis=1, keepdims=True)
    e = jnp.exp(logits_f32 - m)
    s = jnp.sum(e, axis=1, keepdims=True)
    if approx_recip:
        return e * pl.reciprocal(s, approx=True)        # EUP slot, co-issues with VPU
    return e / s


def _column_mask(pn_ref, bt, P):
    """(Bt, 1, P) float mask: 1 for paragraph columns < label_shape[b, 1].
    Single vectorized broadcast compare (no per-batch scalar reads)."""
    col_iota = lax.broadcasted_iota(jnp.int32, (bt, 1, P), 2)
    return (col_iota < pn_ref[...]).astype(jnp.float32)  # pn block is (Bt, 1, 1)


# ----------------------------------------------------------------------------
# Pallas kernels
# ----------------------------------------------------------------------------
def _cost_kernel(logits_ref, lp_ref, cls_ref, lc_t_ref, pn_ref, cost_ref):
    """Matching cost for a tile of Bt batches:
       cdist_L1(softmax(logits), label_para)[masked cols] + cdist_L1(class, label_class)."""
    bt, A, P = logits_ref.shape

    prob = _softmax_articles(logits_ref[...].astype(jnp.float32))      # (Bt,A,P)
    col_mask = _column_mask(pn_ref, bt, P)                             # (Bt,1,P)
    prob_m = prob * col_mask
    lp_m = lp_ref[...].astype(jnp.float32) * col_mask                  # labels {0,1}

    # Binary-label L1 identity: |p - l| = p + l - 2*p*l.  Cross term is one batched
    # MXU matmul; no (A, A, P) intermediate is materialized.
    cross = jnp.einsum('bip,bjp->bij', prob_m, lp_m,
                       preferred_element_type=jnp.float32)             # (Bt,A,A)
    row_p = jnp.sum(prob_m, axis=2, keepdims=True)                     # (Bt,A,1)
    row_l = jnp.sum(lp_m, axis=2)[:, None, :]                          # (Bt,1,A)
    para_cost = row_p + row_l - 2.0 * cross

    # Class cost per channel (no (Bt,A,A,2) broadcast).  classification keeps the
    # natural (Bt,A,2) layout (article on sublanes), label_classi is channel-major
    # (Bt,2,A) (article on lanes) -> both broadcasts are relayout-free.
    c = cls_ref[...]                                                   # (Bt,A,2)
    lc = lc_t_ref[...]                                                 # (Bt,2,A)
    class_cost = (jnp.abs(c[:, :, 0:1] - lc[:, 0:1, :])
                  + jnp.abs(c[:, :, 1:2] - lc[:, 1:2, :]))             # (Bt,A,A)

    cost_ref[...] = para_cost + class_cost


def _loss_kernel(logits_ref, lp_ref, cls_t_ref, lc_perm_t_ref, mask_cls_ref,
                 col_ref, pn_ref, class_out_ref, para_out_ref):
    """Masked L1 losses after the Hungarian permutation; one partial sum per tile."""
    bt, A, P = logits_ref.shape

    prob = _softmax_articles(logits_ref[...].astype(jnp.float32), approx_recip=True)
    col_mask = _column_mask(pn_ref, bt, P)

    # Gather the permuted paragraph labels from the resident tile with a one-hot
    # (A x A) MXU matmul (exact for {0,1} bf16 labels); avoids materializing
    # label_para_perm in HBM (saves a full (b, A, P) write + read in this stage).
    j_iota = lax.broadcasted_iota(jnp.int32, (bt, A, A), 2)            # j on lanes
    onehot = (col_ref[...] == j_iota).astype(lp_ref.dtype)             # [b,i,j]=(col[b,i]==j)
    lp_perm = jnp.einsum('bij,bjp->bip', onehot, lp_ref[...],
                         preferred_element_type=jnp.float32)           # (Bt,A,P)

    para = jnp.sum(jnp.abs(prob - lp_perm) * col_mask)
    clas = jnp.sum(jnp.abs(cls_t_ref[...] - lc_perm_t_ref[...]) * mask_cls_ref[...])
    class_out_ref[...] = jnp.reshape(clas, (1, 1, 1))
    para_out_ref[...] = jnp.reshape(para, (1, 1, 1))


# ----------------------------------------------------------------------------
# pallas_call wrappers
# ----------------------------------------------------------------------------
def _pairwise_cost(logits_bf, label_para_bf, classification, label_classi_t, para_num):
    b_s, A, P = logits_bf.shape
    bt = _pick_batch_tile(b_s, lambda c: _cost_tile_bytes(c, A, P))
    return pl.pallas_call(
        _cost_kernel,
        out_shape=jax.ShapeDtypeStruct((b_s, A, A), jnp.float32),
        grid=(b_s // bt,),
        in_specs=[
            pl.BlockSpec((bt, A, P), lambda b: (b, 0, 0)),   # paragraph_logits (bf16)
            pl.BlockSpec((bt, A, P), lambda b: (b, 0, 0)),   # label_para       (bf16)
            pl.BlockSpec((bt, A, 2), lambda b: (b, 0, 0)),   # classification
            pl.BlockSpec((bt, 2, A), lambda b: (b, 0, 0)),   # label_classi (chan-major)
            pl.BlockSpec((bt, 1, 1), lambda b: (b, 0, 0)),   # para_num
        ],
        out_specs=pl.BlockSpec((bt, A, A), lambda b: (b, 0, 0)),
        compiler_params=pltpu.CompilerParams(
            dimension_semantics=("parallel",),               # megacore-shardable
            vmem_limit_bytes=_vmem_limit_bytes()),
    )(logits_bf, label_para_bf, classification, label_classi_t, para_num)


def _masked_losses(logits_bf, label_para_bf, classification_t, label_classi_perm_t,
                   mask_class, col_ind, para_num):
    b_s, A, P = logits_bf.shape
    bt = _pick_batch_tile(b_s, lambda c: _loss_tile_bytes(c, A, P))
    nt = b_s // bt
    class_p, para_p = pl.pallas_call(
        _loss_kernel,
        out_shape=(jax.ShapeDtypeStruct((nt, 1, 1), jnp.float32),
                   jax.ShapeDtypeStruct((nt, 1, 1), jnp.float32)),
        grid=(nt,),
        in_specs=[
            pl.BlockSpec((bt, A, P), lambda b: (b, 0, 0)),   # paragraph_logits (bf16)
            pl.BlockSpec((bt, A, P), lambda b: (b, 0, 0)),   # label_para       (bf16)
            pl.BlockSpec((bt, 2, A), lambda b: (b, 0, 0)),   # classification   (chan-major)
            pl.BlockSpec((bt, 2, A), lambda b: (b, 0, 0)),   # label_classi perm (chan-major)
            pl.BlockSpec((bt, 1, A), lambda b: (b, 0, 0)),   # class mask (permuted)
            pl.BlockSpec((bt, A, 1), lambda b: (b, 0, 0)),   # Hungarian column indices
            pl.BlockSpec((bt, 1, 1), lambda b: (b, 0, 0)),   # para_num
        ],
        out_specs=(
            pl.BlockSpec((1, 1, 1), lambda b: (b, 0, 0)),    # per-tile class partial
            pl.BlockSpec((1, 1, 1), lambda b: (b, 0, 0)),    # per-tile para partial
        ),
        compiler_params=pltpu.CompilerParams(
            dimension_semantics=("parallel",),               # both TCs on v7x
            vmem_limit_bytes=_vmem_limit_bytes()),
    )(logits_bf, label_para_bf, classification_t, label_classi_perm_t,
      mask_class, col_ind, para_num)
    # A handful of per-tile partials summed in XLA keeps the batch axis parallel.
    return jnp.sum(class_p), jnp.sum(para_p)


# ----------------------------------------------------------------------------
# Host-side Hungarian matching (minimization, square cost matrix)
# ----------------------------------------------------------------------------
def _py_lsa(cost):
    cost = np.asarray(cost, dtype=np.float64)
    n = cost.shape[0]
    INF = float("inf")
    u = np.zeros(n + 1)
    v = np.zeros(n + 1)
    p = np.zeros(n + 1, dtype=np.int64)
    way = np.zeros(n + 1, dtype=np.int64)
    for i in range(1, n + 1):
        p[0] = i
        j0 = 0
        minv = np.full(n + 1, INF)
        used = np.zeros(n + 1, dtype=bool)
        while True:
            used[j0] = True
            i0 = p[j0]
            delta = INF
            j1 = 0
            for j in range(1, n + 1):
                if not used[j]:
                    cur = cost[i0 - 1, j - 1] - u[i0] - v[j]
                    if cur < minv[j]:
                        minv[j] = cur
                        way[j] = j0
                    if minv[j] < delta:
                        delta = minv[j]
                        j1 = j
            for j in range(n + 1):
                if used[j]:
                    u[p[j]] += delta
                    v[j] -= delta
                else:
                    minv[j] -= delta
            j0 = j1
            if p[j0] == 0:
                break
        while True:
            j1 = way[j0]
            p[j0] = p[j1]
            j0 = j1
            if j0 == 0:
                break
    col_of_row = np.zeros(n, dtype=np.int64)
    for j in range(1, n + 1):
        col_of_row[p[j] - 1] = j - 1
    return np.arange(n), col_of_row


def _lsa(cost):
    if _scipy_lsa is not None:
        r, c = _scipy_lsa(cost)
        return np.asarray(r), np.asarray(c)
    return _py_lsa(cost)


def _batched_lsa(cost_np):
    """Per-batch Hungarian assignments on a thread pool (scipy releases the GIL)."""
    b_s = cost_np.shape[0]

    def _solve(b):
        return _lsa(cost_np[b])[1]

    if b_s > 1:
        with ThreadPoolExecutor(max_workers=min(b_s, 16)) as ex:
            cols = list(ex.map(_solve, range(b_s)))
    else:
        cols = [_solve(0)]
    return np.stack(cols, 0)


# ----------------------------------------------------------------------------
# HungaryLoss forward
# ----------------------------------------------------------------------------
class HungaryLossPallas:
    """Pallas-TPU forward of the PyTorch HungaryLoss module.

    Contract: `label_para` must contain {0, 1} entries (as in the original module)
    — the matching cost uses the binary-label L1 identity and the permuted labels
    are gathered with an exact one-hot matmul under that assumption.
    """

    def __init__(self, no_article_weight=0.1):
        self.no_article_weight = float(no_article_weight)

    def __call__(self, label_para, label_shape, label_classi, classification,
                 paragraph_logits):
        label_classi = jnp.asarray(label_classi, jnp.float32)
        classification = jnp.asarray(classification, jnp.float32)
        label_shape = jnp.asarray(label_shape, jnp.int32)
        # The two big (b, A, P) streams travel as bf16 ({0,1} labels are exactly
        # representable); all in-kernel math is upcast to / accumulated in f32.
        logits_bf = jnp.asarray(paragraph_logits).astype(jnp.bfloat16)
        label_para_bf = jnp.asarray(label_para).astype(jnp.bfloat16)
        b_s, A, P = logits_bf.shape

        para_num = label_shape[:, 1].reshape(b_s, 1, 1)             # (b,1,1) int32
        label_classi_t = jnp.transpose(label_classi, (0, 2, 1))     # (b,2,A)

        # --- match step: cost matrices on TPU, assignment on host ---
        cost = _pairwise_cost(logits_bf, label_para_bf, classification,
                              label_classi_t, para_num)
        # TODO(synk): Hungarian matching (linear_sum_assignment) is a sequential
        # combinatorial algorithm with no clean Pallas equivalent; it runs on the
        # host.  Overlapping the D2H copy / loss-kernel dispatch via pure_callback
        # is a further (host-side) optimization not applied here.
        cost_np = np.asarray(jax.device_get(cost))
        col_ind = _batched_lsa(cost_np)
        col_ind_j = jnp.asarray(col_ind, jnp.int32)

        # --- tiny XLA glue: permute the (b,A,2) class labels, build the class mask,
        #     channel-major transposes (A in lanes) ---
        idx = col_ind_j[:, :, None]                                   # (b,A,1)
        label_classi_perm_t = jnp.transpose(
            jnp.take_along_axis(label_classi, idx, axis=1), (0, 2, 1))  # (b,2,A)
        classification_t = jnp.transpose(classification, (0, 2, 1))     # (b,2,A)
        len_ar = label_shape[:, 0][:, None]                             # (b,1)
        mask_class = jnp.where(col_ind_j < len_ar, 1.0,
                               self.no_article_weight).astype(jnp.float32)[:, None, :]

        # --- masked loss reductions on TPU; paragraph labels permuted in-kernel ---
        class_loss, para_loss = _masked_losses(
            logits_bf, label_para_bf, classification_t, label_classi_perm_t,
            mask_class, idx, para_num)
        return class_loss, para_loss


# ----------------------------------------------------------------------------
# Pure numpy reference (mirrors the PyTorch forward)
# ----------------------------------------------------------------------------
def _reference(label_para, label_shape, label_classi, classification,
               paragraph_logits, w):
    lp = np.asarray(label_para, np.float64)
    ls = np.asarray(label_shape)
    lc = np.asarray(label_classi, np.float64)
    cl = np.asarray(classification, np.float64)
    lo = np.asarray(paragraph_logits, np.float64)
    b_s, A, P = lp.shape
    ex = np.exp(lo - lo.max(axis=1, keepdims=True))
    prob = ex / ex.sum(axis=1, keepdims=True)
    class_loss = 0.0
    para_loss = 0.0
    for b in range(b_s):
        ar, pn = int(ls[b, 0]), int(ls[b, 1])
        pc = np.abs(prob[b][:, None, :pn] - lp[b][None, :, :pn]).sum(-1)
        cc = np.abs(cl[b][:, None, :] - lc[b][None, :, :]).sum(-1)
        _, col = _lsa(pc + cc)
        mask_para = np.zeros((A, P)); mask_para[:, :pn] = 1.0
        mask_class = np.ones((A, 2)); mask_class[ar:, :] = w
        para_loss += np.sum(np.abs(prob[b] - lp[b][col]) * mask_para)
        class_loss += np.sum(np.abs(cl[b] - lc[b][col]) * mask_class[col])
    return class_loss, para_loss


if __name__ == "__main__":
    key = jax.random.PRNGKey(0)
    b_s, A, P = 2, 8, 16
    k1, k2, k3, k4 = jax.random.split(key, 4)

    label_para = (jax.random.uniform(k1, (b_s, A, P)) > 0.5).astype(jnp.float32)
    label_classi = jax.nn.one_hot(jax.random.randint(k2, (b_s, A), 0, 2), 2).astype(jnp.float32)
    classification = jax.nn.softmax(jax.random.normal(k3, (b_s, A, 2)), axis=-1).astype(jnp.float32)
    # Quantize logits through bf16 once so the TPU path (bf16 streams) and the
    # float64 reference see bit-identical input values.
    paragraph_logits = jax.random.normal(k4, (b_s, A, P), dtype=jnp.float32)
    paragraph_logits = paragraph_logits.astype(jnp.bfloat16).astype(jnp.float32)
    label_shape = jnp.array([[5, 10], [7, 12]], dtype=jnp.int32)

    loss_mod = HungaryLossPallas(no_article_weight=0.1)
    class_loss, para_loss = loss_mod(label_para, label_shape, label_classi,
                                     classification, paragraph_logits)
    class_loss, para_loss = jax.block_until_ready((class_loss, para_loss))

    ref_class, ref_para = _reference(label_para, label_shape, label_classi,
                                     classification, paragraph_logits, 0.1)

    def _close(x, r):
        return abs(float(x) - r) <= 2e-2 + 5e-3 * abs(r)

    assert _close(class_loss, ref_class), (float(class_loss), ref_class)
    assert _close(para_loss, ref_para), (float(para_loss), ref_para)
    print("KERNEL_OK")
</pallas_src>

<mosaic_0001>
module attributes {stable_mosaic.version = 11 : i64} {
  func.func @_cost_kernel(%arg0: i32, %arg1: memref<2x8x16xbf16, #tpu.memory_space<vmem>>, %arg2: memref<2x8x16xbf16, #tpu.memory_space<vmem>>, %arg3: memref<2x8x2xf32, #tpu.memory_space<vmem>>, %arg4: memref<2x2x8xf32, #tpu.memory_space<vmem>>, %arg5: memref<2x1x1xi32, #tpu.memory_space<vmem>>, %arg6: memref<2x8x8xf32, #tpu.memory_space<vmem>>) attributes {dimension_semantics = [#tpu.dimension_semantics<parallel>], iteration_bounds = array<i64: 1>, scalar_prefetch = 0 : i64, scratch_operands = 0 : i64, tpu.core_type = #tpu.core_type<tc>, window_params = [{transform_indices = @transform_0, window_bounds = array<i64: 2, 8, 16>}, {transform_indices = @transform_1, window_bounds = array<i64: 2, 8, 16>}, {transform_indices = @transform_2, window_bounds = array<i64: 2, 8, 2>}, {transform_indices = @transform_3, window_bounds = array<i64: 2, 2, 8>}, {transform_indices = @transform_4, window_bounds = array<i64: 2, 1, 1>}, {transform_indices = @transform_5, window_bounds = array<i64: 2, 8, 8>}]} {
    %c0 = arith.constant 0 : index
    %c0_0 = arith.constant 0 : index
    %c0_1 = arith.constant 0 : index
    %0 = vector.load %arg1[%c0, %c0_0, %c0_1] : memref<2x8x16xbf16, #tpu.memory_space<vmem>>, vector<2x8x16xbf16>
    %1 = arith.extf %0 : vector<2x8x16xbf16> to vector<2x8x16xf32>
    %cst = arith.constant dense<0xFF800000> : vector<2x16xf32>
    %2 = vector.multi_reduction <maximumf>, %1, %cst [1] : vector<2x8x16xf32> to vector<2x16xf32>
    %3 = vector.shape_cast %2 : vector<2x16xf32> to vector<2x1x16xf32>
    %4 = vector.broadcast %3 : vector<2x1x16xf32> to vector<2x8x16xf32>
    %5 = arith.subf %1, %4 : vector<2x8x16xf32>
    %6 = math.exp %5 : vector<2x8x16xf32>
    %cst_2 = arith.constant dense<0.000000e+00> : vector<2x16xf32>
    %7 = vector.multi_reduction <add>, %6, %cst_2 [1] : vector<2x8x16xf32> to vector<2x16xf32>
    %8 = vector.shape_cast %7 : vector<2x16xf32> to vector<2x1x16xf32>
    %9 = vector.broadcast %8 : vector<2x1x16xf32> to vector<2x8x16xf32>
    %10 = arith.divf %6, %9 : vector<2x8x16xf32>
    %11 = tpu.iota {dimensions = array<i32: 2>} : vector<2x1x16xi32>
    %c0_3 = arith.constant 0 : index
    %c0_4 = arith.constant 0 : index
    %c0_5 = arith.constant 0 : index
    %12 = vector.load %arg5[%c0_3, %c0_4, %c0_5] : memref<2x1x1xi32, #tpu.memory_space<vmem>>, vector<2x1x1xi32>
    %13 = vector.broadcast %12 : vector<2x1x1xi32> to vector<2x1x16xi32>
    %14 = arith.cmpi slt, %11, %13 : vector<2x1x16xi32>
    %15 = arith.extui %14 : vector<2x1x16xi1> to vector<2x1x16xi32>
    %16 = arith.sitofp %15 : vector<2x1x16xi32> to vector<2x1x16xf32>
    %17 = vector.broadcast %16 : vector<2x1x16xf32> to vector<2x8x16xf32>
    %18 = arith.mulf %10, %17 : vector<2x8x16xf32>
    %c0_6 = arith.constant 0 : index
    %c0_7 = arith.constant 0 : index
    %c0_8 = arith.constant 0 : index
    %19 = vector.load %arg2[%c0_6, %c0_7, %c0_8] : memref<2x8x16xbf16, #tpu.memory_space<vmem>>, vector<2x8x16xbf16>
    %20 = arith.extf %19 : vector<2x8x16xbf16> to vector<2x8x16xf32>
    %21 = vector.broadcast %16 : vector<2x1x16xf32> to vector<2x8x16xf32>
    %22 = arith.mulf %20, %21 : vector<2x8x16xf32>
    "tpu.trace_start"() <{level = 10 : i32, message = "bip,bjp->bij"}> : () -> ()
    %cst_9 = arith.constant dense<0.000000e+00> : vector<2x8x8xf32>
    %23 = tpu.matmul %18, %22, %cst_9 {dimension_numbers = #tpu.dot_dimension_numbers<[2], [2], [1], [1], [0, 0, 0, 1, 1, 1], [0], [0]>} : vector<2x8x16xf32>, vector<2x8x16xf32>, vector<2x8x8xf32> -> vector<2x8x8xf32>
    "tpu.trace_stop"() : () -> ()
    %cst_10 = arith.constant dense<0.000000e+00> : vector<2x8xf32>
    %24 = vector.multi_reduction <add>, %18, %cst_10 [2] : vector<2x8x16xf32> to vector<2x8xf32>
    %25 = vector.shape_cast %24 : vector<2x8xf32> to vector<2x8x1xf32>
    %cst_11 = arith.constant dense<0.000000e+00> : vector<2x8xf32>
    %26 = vector.multi_reduction <add>, %22, %cst_11 [2] : vector<2x8x16xf32> to vector<2x8xf32>
    %27 = vector.shape_cast %26 : vector<2x8xf32> to vector<2x1x8xf32>
    %28 = vector.broadcast %25 : vector<2x8x1xf32> to vector<2x8x8xf32>
    %29 = vector.broadcast %27 : vector<2x1x8xf32> to vector<2x8x8xf32>
    %30 = arith.addf %28, %29 : vector<2x8x8xf32>
    %cst_12 = arith.constant 2.000000e+00 : f32
    %31 = vector.broadcast %cst_12 : f32 to vector<2x8x8xf32>
    %32 = arith.mulf %31, %23 : vector<2x8x8xf32>
    %33 = arith.subf %30, %32 : vector<2x8x8xf32>
    %c0_13 = arith.constant 0 : index
    %c0_14 = arith.constant 0 : index
    %c0_15 = arith.constant 0 : index
    %34 = vector.load %arg3[%c0_13, %c0_14, %c0_15] : memref<2x8x2xf32, #tpu.memory_space<vmem>>, vector<2x8x2xf32>
    %c0_16 = arith.constant 0 : index
    %c0_17 = arith.constant 0 : index
    %c0_18 = arith.constant 0 : index
    %35 = vector.load %arg4[%c0_16, %c0_17, %c0_18] : memref<2x2x8xf32, #tpu.memory_space<vmem>>, vector<2x2x8xf32>
    %36 = vector.extract_strided_slice %34 {offsets = [0, 0, 0], sizes = [2, 8, 1], strides = [1, 1, 1]} : vector<2x8x2xf32> to vector<2x8x1xf32>
    %37 = vector.extract_strided_slice %35 {offsets = [0, 0, 0], sizes = [2, 1, 8], strides = [1, 1, 1]} : vector<2x2x8xf32> to vector<2x1x8xf32>
    %38 = vector.broadcast %36 : vector<2x8x1xf32> to vector<2x8x8xf32>
    %39 = vector.broadcast %37 : vector<2x1x8xf32> to vector<2x8x8xf32>
    %40 = arith.subf %38, %39 : vector<2x8x8xf32>
    %41 = math.absf %40 : vector<2x8x8xf32>
    %42 = vector.extract_strided_slice %34 {offsets = [0, 0, 1], sizes = [2, 8, 1], strides = [1, 1, 1]} : vector<2x8x2xf32> to vector<2x8x1xf32>
    %43 = vector.extract_strided_slice %35 {offsets = [0, 1, 0], sizes = [2, 1, 8], strides = [1, 1, 1]} : vector<2x2x8xf32> to vector<2x1x8xf32>
    %44 = vector.broadcast %42 : vector<2x8x1xf32> to vector<2x8x8xf32>
    %45 = vector.broadcast %43 : vector<2x1x8xf32> to vector<2x8x8xf32>
    %46 = arith.subf %44, %45 : vector<2x8x8xf32>
    %47 = math.absf %46 : vector<2x8x8xf32>
    %48 = arith.addf %41, %47 : vector<2x8x8xf32>
    %49 = arith.addf %33, %48 : vector<2x8x8xf32>
    %c0_19 = arith.constant 0 : index
    %c0_20 = arith.constant 0 : index
    %c0_21 = arith.constant 0 : index
    %50 = vector.load %arg6[%c0_19, %c0_20, %c0_21] : memref<2x8x8xf32, #tpu.memory_space<vmem>>, vector<2x8x8xf32>
    tpu.vector_store %arg6[%c0_19, %c0_20, %c0_21], %49 {strides = array<i32>} : memref<2x8x8xf32, #tpu.memory_space<vmem>>, vector<2x8x8xf32>,
    return
  }
  func.func @transform_0(%arg0: i32) -> (i32, i32, i32) {
    %c0_i32 = arith.constant 0 : i32
    %c0_i32_0 = arith.constant 0 : i32
    %c0_i32_1 = arith.constant 0 : i32
    return %arg0, %c0_i32, %c0_i32_0 : i32, i32, i32
  }
  func.func @transform_1(%arg0: i32) -> (i32, i32, i32) {
    %c0_i32 = arith.constant 0 : i32
    %c0_i32_0 = arith.constant 0 : i32
    %c0_i32_1 = arith.constant 0 : i32
    return %arg0, %c0_i32, %c0_i32_0 : i32, i32, i32
  }
  func.func @transform_2(%arg0: i32) -> (i32, i32, i32) {
    %c0_i32 = arith.constant 0 : i32
    %c0_i32_0 = arith.constant 0 : i32
    %c0_i32_1 = arith.constant 0 : i32
    return %arg0, %c0_i32, %c0_i32_0 : i32, i32, i32
  }
  func.func @transform_3(%arg0: i32) -> (i32, i32, i32) {
    %c0_i32 = arith.constant 0 : i32
    %c0_i32_0 = arith.constant 0 : i32
    %c0_i32_1 = arith.constant 0 : i32
    return %arg0, %c0_i32, %c0_i32_0 : i32, i32, i32
  }
  func.func @transform_4(%arg0: i32) -> (i32, i32, i32) {
    %c0_i32 = arith.constant 0 : i32
    %c0_i32_0 = arith.constant 0 : i32
    %c0_i32_1 = arith.constant 0 : i32
    return %arg0, %c0_i32, %c0_i32_0 : i32, i32, i32
  }
  func.func @transform_5(%arg0: i32) -> (i32, i32, i32) {
    %c0_i32 = arith.constant 0 : i32
    %c0_i32_0 = arith.constant 0 : i32
    %c0_i32_1 = arith.constant 0 : i32
    return %arg0, %c0_i32, %c0_i32_0 : i32, i32, i32
  }
}

</mosaic_0001>

<bundles_post_ra>
// kernel: tpu_custom_call.1
= control target key start
LH: loop header
LB: loop body
LE: loop exit
PB: predicated region body
PF: predicated region fallthrough
CT: control target
= control target key end

     0   :  { %v327_v1 = vmov 0   ;;  %s414_s0 = inlined_call_operand.vmem [shape: bf16[2,8,16], index: 0, kind: input, shape index: {}]   ;;  %s415_s1 = inlined_call_operand.vmem [shape: bf16[2,8,16], index: 1, kind: input, shape index: {}]   ;;  %s416_s2 = inlined_call_operand.vmem [shape: f32[2,8,2], index: 2, kind: input, shape index: {}]   ;;  %s417_s3 = inlined_call_operand.vmem [shape: f32[2,2,8], index: 3, kind: input, shape index: {}]   ;;  %s418_s4 = inlined_call_operand.vmem [shape: s32[2,1,1], index: 4, kind: input, shape index: {}]   ;;  %s419_s5 = inlined_call_operand.hbm [shape: f32[2,8,8], index: 5, kind: output, shape index: {}]  }
   0x1   :  { %v92_v0 = vld [vmem:[%s418_s4] sm:$0x1]  ;;  %289 = vset.pattern.permute.xlu0 %v327_v1  ;;  %290 = vset.pattern.permute.xlu2 %v327_v1 }
   0x2   :  { %v369_v2 = vld [vmem:[%s416_s2] sm:$0xff] }
   0x3   :  { %10 = vsyncpa [#allocation3], 0  ;;  %95 = vperm.xlu0 %289, %v92_v0   ;;  %216 = vperm.xlu2 %290, %v369_v2   ;;  %v328_v3 = vmov 1   ;;  %v93_v4 = vld [vmem:[%s418_s4 + $0x1] sm:$0x1]  ;;  %v211_v5 = vld [vmem:[%s416_s2 + $0x8] sm:$0xff]  ;;  %v90_v54 = vlaneseq }
   0x4   :  { %291 = vset.pattern.permute.xlu1 %v328_v3  ;;  %v276_v6 = vld [vmem:[%s414_s0] sm:$0xff]   ;;  %vm25_vm0 = vcmask 130048   ;;  %vm248_vm11 = vcmask 64512   ;;  %s330_s30 = smov [#allocation2]   ;;  %s257_s8 = sshll.u32 %s419_s5, 4  ;;  %s258_s8 = int_to_ptr.hbm [resolvable:$true] %s257_s8 }
   0x5   :  { %v277_v7 = vunpack.c.l.bf16 %v276_v6  ;;  %v278_v12 = vunpack.c.h.bf16 %v276_v6  ;;  %v280_v56 = vld [vmem:[%s415_s1] sm:$0xff]   ;;  %v388_v59 = vand.u32 127, %v90_v54  ;;  %s255_s6 = sshll.u32 %s330_s30, 4  ;;  %s331_s9 = smov 128   ;;  %s256_s6 = int_to_ptr.vmem [resolvable:$true] %s255_s6 }
   0x6   :  { %v281_v62 = vunpack.c.l.bf16 %v280_v56  ;;  %s332_s10 = smov 8  }
   0x7   :  { %v26_v8 = vsel %vm25_vm0, %v277_v7, -inf  ;;  %v33_v14 = vsel %vm25_vm0, %v278_v12, -inf }
   0x8   :  { %v27_v9 = vrot.slane %v26_v8, 4  ;;  %v34_v16 = vrot.slane %v33_v14, 4 }
   0xa   :  { %v28_v10 = vmax.f32 %v26_v8, %v27_v9  ;;  %v35_v18 = vmax.f32 %v33_v14, %v34_v16  ;;  %v282_v14 = vunpack.c.h.bf16 %v280_v56 }
   0xb   :  { %99 = vperm.xlu0 %289, %v93_v4   ;;  %v329_v4 = vmov 0.0  }
   0xc   :  { %v29_v11 = vrot.slane %v28_v10, 2  ;;  %v36_v20 = vrot.slane %v35_v18, 2 }
   0xe   :  { %v30_v13 = vmax.f32 %v28_v10, %v29_v11  ;;  %v37_v22 = vmax.f32 %v35_v18, %v36_v20 }
  0x10   :  { %v31_v15 = vrot.slane %v30_v13, 1  ;;  %v38_v23 = vrot.slane %v37_v22, 1 }
  0x12   :  { %v32_v17 = vmax.f32 %v30_v13, %v31_v15  ;;  %v39_v24 = vmax.f32 %v37_v22, %v38_v23 }
  0x13   :  { %221 = vperm.xlu0 %289, %v211_v5  }
  0x14   :  { %v40_v19 = vsub.f32 %v277_v7, %v32_v17  ;;  %v41_v25 = vsub.f32 %v278_v12, %v39_v24 }
  0x16   :  { %v42_v21 = vmul.f32 1.442695, %v40_v19  ;;  %v44_v27 = vmul.f32 1.442695, %v41_v25  ;;  %v213_v25 = vld [vmem:[%s417_s3 + $0x2] sm:$0x3] }
  0x18   :  { %293 = vpow2.f32 %v42_v21 }
  0x19   :  { %295 = vpow2.f32 %v44_v27 }
  0x1b   :  { %292 = vset.pattern.permute.xlu0 %v328_v3 }
  0x1c   :  { %235 = vperm.xlu0 %292, %v211_v5  }
  0x1e   :  { %v294_v26 = vpop.eup %293 }
  0x1f   :  { %v46_v28 = vsel %vm25_vm0, %v294_v26, 0.0  ;;  %v296_v31 = vpop.eup %295 }
  0x20   :  { %v47_v29 = vrot.slane %v46_v28, 4  ;;  %v53_v33 = vsel %vm25_vm0, %v296_v31, 0.0 }
  0x21   :  { %v54_v34 = vrot.slane %v53_v33, 4 }
  0x22   :  { %v48_v30 = vadd.f32 %v47_v29, %v46_v28  ;;  %v225_v28 = vperm.slane %v213_v25, 0 }
  0x23   :  { %v55_v36 = vadd.f32 %v54_v34, %v53_v33 }
  0x24   :  { %v49_v32 = vrot.slane %v48_v30, 2 }
  0x25   :  { %v56_v38 = vrot.slane %v55_v36, 2 }
  0x26   :  { %v50_v35 = vadd.f32 %v49_v32, %v48_v30 }
  0x27   :  { %v57_v40 = vadd.f32 %v56_v38, %v55_v36 }
  0x28   :  { %v51_v37 = vrot.slane %v50_v35, 1 }
  0x29   :  { %v58_v41 = vrot.slane %v57_v40, 1 }
  0x2a   :  { %v52_v39 = vadd.f32 %v51_v37, %v50_v35 }
  0x2b   :  { %v59_v43 = vadd.f32 %v58_v41, %v57_v40  ;;  %v212_v40 = vld [vmem:[%s417_s3] sm:$0x3] }
  0x2c   :  { %297 = vrcp.f32 %v52_v39  ;;  %vm65_vm1 = vweird.f32 %v52_v39  ;;  %v71_v48 = vand.u32 2147483648, %v52_v39  ;;  %v69_v51 = vand.u32 2147483647, %v52_v39 }
  0x2d   :  { %299 = vrcp.f32 %v59_v43  ;;  %vm80_vm5 = vweird.f32 %v59_v43  ;;  %v86_v0 = vand.u32 2147483648, %v59_v43  ;;  %v84_v3 = vand.u32 2147483647, %v59_v43 }
  0x2e   :  { %v72_v52 = vor.u32 1.1754944e-38, %v71_v48  ;;  %vm70_vm4 = vcmp.eq.f32.partialorder %v69_v51, 8.507059e+37 }
  0x2f   :  { %v87_v8 = vor.u32 1.1754944e-38, %v86_v0  ;;  %vm85_vm9 = vcmp.eq.f32.partialorder %v84_v3, 8.507059e+37 }
  0x32   :  { %v298_v42 = vpop.eup %297 }
  0x33   :  { %v61_v44 = vmul.f32 %v298_v42, %v52_v39  ;;  %v300_v46 = vpop.eup %299  ;;  %vm66_vm2 = vweird.f32 %v298_v42 }
  0x34   :  { %v76_v49 = vmul.f32 %v300_v46, %v59_v43  ;;  %vm67_vm3 = vmor %vm65_vm1, %vm66_vm2  ;;  %vm81_vm6 = vweird.f32 %v300_v46  ;;  %v224_v43 = vperm.slane %v212_v40, 0 }
  0x35   :  { %v62_v45 = vsub.f32 1.0, %v61_v44  ;;  %vm82_vm8 = vmor %vm80_vm5, %vm81_vm6  ;;  %v238_v44 = vperm.slane %v212_v40, 1 }
  0x36   :  { %v77_v53 = vsub.f32 1.0, %v76_v49 }
  0x37   :  { %v63_v47 = vmul.f32 %v298_v42, %v62_v45 }
  0x38   :  { %v78_v58 = vmul.f32 %v300_v46, %v77_v53 }
  0x39   :  { %v64_v50 = vadd.f32 %v298_v42, %v63_v47 }
  0x3a   :  { %v79_v1 = vadd.f32 %v300_v46, %v78_v58 }
  0x3b   :  { %v68_v55 = vsel %vm67_vm3, %v298_v42, %v64_v50 }
  0x3c   :  { %v73_v57 = vsel %vm70_vm4, %v72_v52, %v68_v55  ;;  %v83_v9 = vsel %vm82_vm8, %v300_v46, %v79_v1 }
  0x3d   :  { %v74_v63 = vmul.f32 %v294_v26, %v73_v57  ;;  %v88_v13 = vsel %vm85_vm9, %v87_v8, %v83_v9  ;;  %v239_v26 = vperm.slane %v213_v25, 1 }
  0x3e   :  { %v89_v15 = vmul.f32 %v296_v31, %v88_v13 }
  0x5d   :  { %v217_v22 = vpop.permute.xlu2 %216 }
  0x5e   :  { %v226_v46 = vsub.f32 %v217_v22, %v224_v43 }
  0x60   :  { %v228_v51 = vand.u32 2147483647, %v226_v46 }
  0x75   :  { %v96_v60 = vpop.permute.xlu0 %95 }
  0x76   :  { %v97_v61 = vperm.slane %v96_v60, 0 }
  0x78   :  { %vm102_vm7 = vcmp.lt.s32.totalorder %v388_v59, %v97_v61 }
  0x79   :  { %v269_v5 = vsel %vm102_vm7, 1.0, %v329_v4 }
  0x7a   :  { %v114_v6 = vmul.f32 %v281_v62, %v269_v5  ;;  %v108_v7 = vmul.f32 %v269_v5, %v74_v63 }
  0x7c   :  { %271 = vmatpush.xpose.msk.msra.mxu0 %vm25_vm0, %v114_v6  ;;  %v168_v10 = vsel %vm25_vm0, %v108_v7, 0.0  ;;  %v174_v19 = vsel %vm25_vm0, %v114_v6, 0.0 }
  0x7d   :  { %v100_v11 = vpop.permute.xlu0 %99  ;;  %169 = vadd.xlane.f32.xlu1 %v168_v10 }
  0x7e   :  { %v101_v12 = vperm.slane %v100_v11, 0 }
  0x7f   :  { %272 = vmatmul.msk.f32.vlgmr.msra.gmra.mxu0 %vm25_vm0, %v108_v7 }
  0x80   :  { %vm103_vm10 = vcmp.lt.s32.totalorder %v388_v59, %v101_v12 }
  0x81   :  { %v270_v16 = vsel %vm103_vm10, 1.0, %v329_v4 }
  0x82   :  { %v115_v17 = vmul.f32 %v282_v14, %v270_v16  ;;  %v109_v20 = vmul.f32 %v270_v16, %v89_v15 }
  0x84   :  { %273 = vmatpush.xpose.msk.msra.mxu1 %vm25_vm0, %v115_v17  ;;  %v177_v18 = vsel %vm25_vm0, %v115_v17, 0.0  ;;  %v171_v21 = vsel %vm25_vm0, %v109_v20, 0.0 }
  0x85   :  { %178 = vadd.xlane.f32.xlu2 %v177_v18  ;;  %175 = vadd.xlane.f32.xlu1 %v174_v19  ;;  %v222_v23 = vpop.permute.xlu0 %221 }
  0x86   :  { %v227_v31 = vsub.f32 %v222_v23, %v225_v28 }
  0x87   :  { %274 = vmatmul.msk.f32.vlgmr.msra.gmra.mxu1 %vm25_vm0, %v109_v20 }
  0x88   :  { %v229_v36 = vand.u32 2147483647, %v227_v31 }
  0x8d   :  { %172 = vadd.xlane.f32.xlu2 %v171_v21 }
  0x8e   :  { %v236_v27 = vpop.permute.xlu0 %235 }
  0x8f   :  { %v241_v30 = vsub.f32 %v236_v27, %v239_v26 }
  0x91   :  { %v243_v33 = vand.u32 2147483647, %v241_v30 }
  0x93   :  { %v245_v38 = vadd.f32 %v243_v33, %v229_v36 }
  0x9e   :  { %231 = vperm.xlu1 %291, %v369_v2  }
  0xf0   :  { %v170_v29 = vpop.xlane.xlu1 %169 }
  0xf8   :  { %v179_v24 = vpop.xlane.xlu2 %178  ;;  %v176_v41 = vpop.xlane.xlu1 %175 }
  0xf9   :  { %v183_v34 = vperm.slane %v179_v24, %v388_v59  ;;  %v182_v47 = vperm.slane %v176_v41, %v388_v59 }
  0xfb   :  { %v204_v52 = vadd.f32 %v182_v47, %v170_v29 }
  0xfc   :  { %v139_v45 = vpop.f32.mrf.mxu0 }
  0xfd   :  { %v206_v49 = vmul.f32 2.0, %v139_v45 }
  0xff   :  { %v208_v54 = vsub.f32 %v204_v52, %v206_v49 }
 0x100   :  { %v173_v32 = vpop.xlane.xlu2 %172 }
 0x101   :  { %v205_v2 = vadd.f32 %v183_v34, %v173_v32 }
 0x104   :  { %v165_v35 = vpop.f32.mrf.mxu1 }
 0x105   :  { %v207_v37 = vmul.f32 2.0, %v165_v35 }
 0x107   :  { %v209_v39 = vsub.f32 %v205_v2, %v207_v37 }
 0x109   :  { %v247_v42 = vadd.f32 %v245_v38, %v209_v39 }
 0x10b   :  { %250 = vst.msk [vmem:[#allocation2 + $0x8] sm:$0xff] %vm248_vm11, %v247_v42 }
 0x110   :  { %v232_v48 = vpop.permute.xlu1 %231 }
 0x111   :  { %v240_v50 = vsub.f32 %v232_v48, %v238_v44 }
 0x113   :  { %v242_v53 = vand.u32 2147483647, %v240_v50 }
 0x115   :  { %v244_v55 = vadd.f32 %v242_v53, %v228_v51 }
 0x117   :  { %v246_v56 = vadd.f32 %v244_v55, %v208_v54 }
 0x119   :  { %249 = vst.msk [vmem:[#allocation2] sm:$0xff] %vm248_vm11, %v246_v56 }
 0x11a   :  { %263 = dma.vmem_to_hbm [thread:$0]  %s256_s6, 256, %s258_s8, [#allocation3], %s331_s9, %s331_s9, %s332_s10  }
 0x11b   :  { %325 = dma.done.wait [#allocation3], 256  }
 0x11c   :  { %326 = vsyncadd [#allocation3], 4294967040 }
 0x11d   :  { %268 = vsyncpa [#allocation3], 1 }

</bundles_post_ra>
